<compile_context>
chip_gen: v7x
topology: tpu7x:2x2x1
jax: 0.10.0
libtpu: 0.0.40
codegen_flags: <defaults>
</compile_context>

<pallas_src>
import functools

import jax
import jax.numpy as jnp
from jax.experimental import pallas as pl
from jax.experimental.pallas import tpu as pltpu


def _round_up(x, m):
    return ((x + m - 1) // m) * m


# --- Generation-aware VMEM capacity (queried once at import). ---------------
def _query_vmem_capacity():
    try:
        return int(pltpu.get_tpu_info().vmem_capacity_bytes)
    except Exception:
        return 64 << 20   # conservative default, valid on every generation


_VMEM_CAP = _query_vmem_capacity()
_VMEM_HEADROOM = 16 << 20       # leave room for Mosaic internal scratch


# --- Kernel: Linear -> ReLU -> Linear -> Sigmoid on one batch tile ----------
def _dtb_kernel(p_ref, w1_ref, b1_ref, w2_ref, b2_ref, o_ref):
    # p_ref : (TN, Fp)  pooled + flattened features (zero padded)
    # w1_ref: (Fp, Mp)  first Linear weight, pre-transposed to (in, out)
    # b1_ref: (1, Mp)   f32
    # w2_ref: (Mp, Fp)  second Linear weight, pre-transposed to (in, out)
    # b2_ref: (1, Fp)   f32
    # o_ref : (TN, Fp)
    h = jnp.dot(p_ref[...], w1_ref[...], preferred_element_type=jnp.float32)
    h = jnp.maximum(h + b1_ref[...], 0.0)                       # bias + ReLU
    y = jnp.dot(h.astype(w2_ref.dtype), w2_ref[...],
                preferred_element_type=jnp.float32)
    o_ref[...] = jax.nn.sigmoid(y + b2_ref[...]).astype(o_ref.dtype)


# --- One-time parameter preparation (hoisted out of the forward path) -------
def prepare_dtb_params(w1, b1, w2, b2, compute_dtype=None):
    """Pad + pre-transpose the PyTorch-layout Linear parameters once.

    w1: (ch_mid, ch_inout)   b1: (ch_mid,)
    w2: (ch_inout, ch_mid)   b2: (ch_inout,)
    Returns (w1t_p, b1_p, w2t_p, b2_p) with lane-dense 128-multiple shapes.
    """
    M, F = w1.shape
    assert w2.shape == (F, M) and b1.shape == (M,) and b2.shape == (F,)
    dt = compute_dtype if compute_dtype is not None else w1.dtype
    Fp = _round_up(F, 128)
    Mp = _round_up(M, 128)
    # Pre-transpose so the kernel contracts LHS dim-1 with RHS dim-0 directly.
    w1t_p = jnp.pad(w1.astype(dt).T, ((0, Fp - F), (0, Mp - M)))        # (Fp, Mp)
    w2t_p = jnp.pad(w2.astype(dt).T, ((0, Mp - M), (0, Fp - F)))        # (Mp, Fp)
    # Biases kept in f32 (added to the f32 MXU accumulators).
    b1_p = jnp.pad(b1.astype(jnp.float32), (0, Mp - M)).reshape(1, Mp)
    b2_p = jnp.pad(b2.astype(jnp.float32), (0, Fp - F)).reshape(1, Fp)
    return (w1t_p, b1_p, w2t_p, b2_p)


# --- Forward pass ------------------------------------------------------------
@functools.partial(jax.jit, static_argnames=("kernel_size", "single_buffer_weights"))
def dimension_transform_block(x, params, kernel_size, single_buffer_weights=True):
    """x: (N, C, H, W) NCHW. params: output of prepare_dtb_params. -> (N, ch_inout)."""
    w1t_p, b1_p, w2t_p, b2_p = params
    N, C, H, W = x.shape
    k = kernel_size
    assert H % k == 0 and W % k == 0
    Ho, Wo = H // k, W // k
    F = C * Ho * Wo                            # == ch_inout
    Fp, Mp = w1t_p.shape
    assert Fp == _round_up(F, 128), "params were prepared for a different ch_inout"
    assert w2t_p.shape == (Mp, Fp)

    # AvgPool2d + Flatten: fused reshape + mean, single pass over x.
    pooled = x.reshape(N, C, Ho, k, Wo, k).mean(axis=(3, 5), dtype=jnp.float32)
    pooled = pooled.astype(w1t_p.dtype).reshape(N, F)

    # --- Batch tiling: minimal padding, >=2 grid steps when N allows (v7x
    #     megacore), rows rounded to the dtype's packed-sublane multiple. ----
    in_itemsize = jnp.dtype(pooled.dtype).itemsize
    sub = 8 * max(1, 4 // in_itemsize)         # 8 f32, 16 bf16, 32 int8/fp8
    max_tn = 512 if _VMEM_CAP >= (96 << 20) else 256
    n_tiles = -(-N // max_tn)
    if N >= 2 * sub:
        n_tiles = max(n_tiles, 2)
    TN = _round_up(-(-N // n_tiles), sub)
    Np = _round_up(N, TN)

    pooled_p = jnp.pad(pooled, ((0, Np - N), (0, Fp - F)))

    # --- VMEM budget: weights counted once (single-buffered), plus the live
    #     f32 intermediates, capped below the per-core physical capacity. ----
    out_itemsize = jnp.dtype(x.dtype).itemsize
    w_itemsize = jnp.dtype(w1t_p.dtype).itemsize
    wbuf = 1 if single_buffer_weights else 2
    vmem_need = (
        2 * TN * Fp * in_itemsize              # double-buffered input tile
        + 2 * TN * Fp * out_itemsize           # double-buffered output tile
        + wbuf * 2 * Mp * Fp * w_itemsize      # two weight matrices
        + wbuf * (Mp + Fp) * 4                 # biases (f32)
        + TN * Mp * 4 + TN * Fp * 4            # f32 intermediates h, y
        + (4 << 20)                            # epilogue / internal scratch headroom
    )
    vmem_limit = int(min(max(vmem_need, 32 << 20), _VMEM_CAP - _VMEM_HEADROOM))

    # Grid-invariant operands: single-buffer them (no re-fetch, half the VMEM).
    inv_kwargs = {"pipeline_mode": pl.Buffered(1)} if single_buffer_weights else {}

    grid = (Np // TN,)
    out = pl.pallas_call(
        _dtb_kernel,
        out_shape=jax.ShapeDtypeStruct((Np, Fp), x.dtype),
        grid_spec=pltpu.PrefetchScalarGridSpec(
            num_scalar_prefetch=0,
            grid=grid,
            in_specs=[
                pl.BlockSpec((TN, Fp), lambda i: (i, 0)),              # batch-tiled input
                pl.BlockSpec((Fp, Mp), lambda i: (0, 0), **inv_kwargs),  # w1^T (invariant)
                pl.BlockSpec((1, Mp), lambda i: (0, 0), **inv_kwargs),   # b1
                pl.BlockSpec((Mp, Fp), lambda i: (0, 0), **inv_kwargs),  # w2^T (invariant)
                pl.BlockSpec((1, Fp), lambda i: (0, 0), **inv_kwargs),   # b2
            ],
            out_specs=pl.BlockSpec((TN, Fp), lambda i: (i, 0)),
        ),
        compiler_params=pltpu.CompilerParams(
            dimension_semantics=("parallel",),   # megacore sharding on v7x
            vmem_limit_bytes=vmem_limit,
        ),
    )(pooled_p, w1t_p, b1_p, w2t_p, b2_p)

    return out[:N, :F]


# --- Pure-JAX reference mirroring the PyTorch module -------------------------
def _reference(x, w1, b1, w2, b2, kernel_size):
    N, C, H, W = x.shape
    k = kernel_size
    Ho, Wo = H // k, W // k
    xg = x.reshape(N, C, Ho, k, Wo, k).mean(axis=(3, 5))          # AvgPool2d
    flat = xg.reshape(N, -1)                                       # Flatten
    h = jnp.maximum(flat @ w1.T + b1, 0.0)                         # Linear + ReLU
    return jax.nn.sigmoid(h @ w2.T + b2)                           # Linear + Sigmoid


if __name__ == "__main__":
    # Small shapes: batch=2, channels=16, spatial=8x8, global avg pool (k=8)
    #  -> ch_inout = 16, ch_mid = 32
    N, C, H, W = 2, 16, 8, 8
    kernel_size = 8
    ch_inout = C * (H // kernel_size) * (W // kernel_size)   # 16
    ch_mid = 32

    key = jax.random.PRNGKey(0)
    kx, k1, k2, k3, k4 = jax.random.split(key, 5)

    x = jax.random.normal(kx, (N, C, H, W), dtype=jnp.float32)

    # Deterministic parameter init (PyTorch-Linear-style uniform bounds).
    bound1 = 1.0 / jnp.sqrt(jnp.float32(ch_inout))
    bound2 = 1.0 / jnp.sqrt(jnp.float32(ch_mid))
    w1 = jax.random.uniform(k1, (ch_mid, ch_inout), jnp.float32, -bound1, bound1)
    b1 = jax.random.uniform(k2, (ch_mid,), jnp.float32, -bound1, bound1)
    w2 = jax.random.uniform(k3, (ch_inout, ch_mid), jnp.float32, -bound2, bound2)
    b2 = jax.random.uniform(k4, (ch_inout,), jnp.float32, -bound2, bound2)

    # Hoisted out of the forward path: pad + pre-transpose the static weights once.
    params = prepare_dtb_params(w1, b1, w2, b2)

    try:
        out = dimension_transform_block(x, params, kernel_size,
                                        single_buffer_weights=True)
        out = jax.block_until_ready(out)
    except Exception:
        # Fallback if this JAX build rejects pl.Buffered(1) on grid-invariant specs.
        out = dimension_transform_block(x, params, kernel_size,
                                        single_buffer_weights=False)
        out = jax.block_until_ready(out)

    ref = _reference(x, w1, b1, w2, b2, kernel_size)
    assert out.shape == (N, ch_inout)
    assert jnp.allclose(out, ref, atol=1e-5, rtol=1e-5)

    print("KERNEL_OK")
</pallas_src>

<mosaic_0001>
module attributes {stable_mosaic.version = 11 : i64} {
  func.func @_dtb_kernel(%arg0: i32, %arg1: memref<8x128xf32, #tpu.memory_space<vmem>>, %arg2: memref<128x128xf32, #tpu.memory_space<vmem>>, %arg3: memref<1x128xf32, #tpu.memory_space<vmem>>, %arg4: memref<128x128xf32, #tpu.memory_space<vmem>>, %arg5: memref<1x128xf32, #tpu.memory_space<vmem>>, %arg6: memref<8x128xf32, #tpu.memory_space<vmem>>) attributes {dimension_semantics = [#tpu.dimension_semantics<parallel>], iteration_bounds = array<i64: 1>, scalar_prefetch = 0 : i64, scratch_operands = 0 : i64, tpu.core_type = #tpu.core_type<tc>, window_params = [{transform_indices = @transform_0, window_bounds = array<i64: 8, 128>}, {pipeline_mode = #tpu.pipeline_mode<synchronous>, transform_indices = @transform_1, window_bounds = array<i64: 128, 128>}, {pipeline_mode = #tpu.pipeline_mode<synchronous>, transform_indices = @transform_2, window_bounds = array<i64: 1, 128>}, {pipeline_mode = #tpu.pipeline_mode<synchronous>, transform_indices = @transform_3, window_bounds = array<i64: 128, 128>}, {pipeline_mode = #tpu.pipeline_mode<synchronous>, transform_indices = @transform_4, window_bounds = array<i64: 1, 128>}, {transform_indices = @transform_5, window_bounds = array<i64: 8, 128>}]} {
    %c0 = arith.constant 0 : index
    %c0_0 = arith.constant 0 : index
    %0 = vector.load %arg1[%c0, %c0_0] : memref<8x128xf32, #tpu.memory_space<vmem>>, vector<8x128xf32>
    %c0_1 = arith.constant 0 : index
    %c0_2 = arith.constant 0 : index
    %1 = vector.load %arg2[%c0_1, %c0_2] : memref<128x128xf32, #tpu.memory_space<vmem>>, vector<128x128xf32>
    %cst = arith.constant dense<0.000000e+00> : vector<8x128xf32>
    %2 = tpu.matmul %0, %1, %cst {dimension_numbers = #tpu.dot_dimension_numbers<[1], [0], [0], [1], [0, 0, 1, 1], [], []>} : vector<8x128xf32>, vector<128x128xf32>, vector<8x128xf32> -> vector<8x128xf32>
    %c0_3 = arith.constant 0 : index
    %c0_4 = arith.constant 0 : index
    %3 = vector.load %arg3[%c0_3, %c0_4] : memref<1x128xf32, #tpu.memory_space<vmem>>, vector<1x128xf32>
    %4 = vector.broadcast %3 : vector<1x128xf32> to vector<8x128xf32>
    %5 = arith.addf %2, %4 : vector<8x128xf32>
    %cst_5 = arith.constant 0.000000e+00 : f32
    %6 = vector.broadcast %cst_5 : f32 to vector<8x128xf32>
    %7 = arith.maximumf %5, %6 : vector<8x128xf32>
    %c0_6 = arith.constant 0 : index
    %c0_7 = arith.constant 0 : index
    %8 = vector.load %arg4[%c0_6, %c0_7] : memref<128x128xf32, #tpu.memory_space<vmem>>, vector<128x128xf32>
    %cst_8 = arith.constant dense<0.000000e+00> : vector<8x128xf32>
    %9 = tpu.matmul %7, %8, %cst_8 {dimension_numbers = #tpu.dot_dimension_numbers<[1], [0], [0], [1], [0, 0, 1, 1], [], []>} : vector<8x128xf32>, vector<128x128xf32>, vector<8x128xf32> -> vector<8x128xf32>
    %c0_9 = arith.constant 0 : index
    %c0_10 = arith.constant 0 : index
    %10 = vector.load %arg5[%c0_9, %c0_10] : memref<1x128xf32, #tpu.memory_space<vmem>>, vector<1x128xf32>
    %11 = vector.broadcast %10 : vector<1x128xf32> to vector<8x128xf32>
    %12 = arith.addf %9, %11 : vector<8x128xf32>
    %13 = arith.negf %12 : vector<8x128xf32>
    %14 = math.exp %13 : vector<8x128xf32>
    %cst_11 = arith.constant 1.000000e+00 : f32
    %15 = vector.broadcast %cst_11 : f32 to vector<8x128xf32>
    %16 = arith.addf %15, %14 : vector<8x128xf32>
    %17 = arith.divf %15, %16 : vector<8x128xf32>
    %c0_12 = arith.constant 0 : index
    %c0_13 = arith.constant 0 : index
    %18 = vector.load %arg6[%c0_12, %c0_13] : memref<8x128xf32, #tpu.memory_space<vmem>>, vector<8x128xf32>
    tpu.vector_store %arg6[%c0_12, %c0_13], %17 {strides = array<i32>} : memref<8x128xf32, #tpu.memory_space<vmem>>, vector<8x128xf32>,
    return
  }
  func.func @transform_0(%arg0: i32) -> (i32, i32) {
    %c0_i32 = arith.constant 0 : i32
    %c0_i32_0 = arith.constant 0 : i32
    return %arg0, %c0_i32 : i32, i32
  }
  func.func @transform_1(%arg0: i32) -> (i32, i32) {
    %c0_i32 = arith.constant 0 : i32
    %c0_i32_0 = arith.constant 0 : i32
    %c0_i32_1 = arith.constant 0 : i32
    return %c0_i32, %c0_i32_0 : i32, i32
  }
  func.func @transform_2(%arg0: i32) -> (i32, i32) {
    %c0_i32 = arith.constant 0 : i32
    %c0_i32_0 = arith.constant 0 : i32
    %c0_i32_1 = arith.constant 0 : i32
    return %c0_i32, %c0_i32_0 : i32, i32
  }
  func.func @transform_3(%arg0: i32) -> (i32, i32) {
    %c0_i32 = arith.constant 0 : i32
    %c0_i32_0 = arith.constant 0 : i32
    %c0_i32_1 = arith.constant 0 : i32
    return %c0_i32, %c0_i32_0 : i32, i32
  }
  func.func @transform_4(%arg0: i32) -> (i32, i32) {
    %c0_i32 = arith.constant 0 : i32
    %c0_i32_0 = arith.constant 0 : i32
    %c0_i32_1 = arith.constant 0 : i32
    return %c0_i32, %c0_i32_0 : i32, i32
  }
  func.func @transform_5(%arg0: i32) -> (i32, i32) {
    %c0_i32 = arith.constant 0 : i32
    %c0_i32_0 = arith.constant 0 : i32
    return %arg0, %c0_i32 : i32, i32
  }
}

module attributes {stable_mosaic.version = 11 : i64} {
  func.func @_dtb_kernel(%arg0: i32, %arg1: memref<8x128xf32, #tpu.memory_space<vmem>>, %arg2: memref<128x128xf32, #tpu.memory_space<vmem>>, %arg3: memref<1x128xf32, #tpu.memory_space<vmem>>, %arg4: memref<128x128xf32, #tpu.memory_space<vmem>>, %arg5: memref<1x128xf32, #tpu.memory_space<vmem>>, %arg6: memref<8x128xf32, #tpu.memory_space<vmem>>) attributes {dimension_semantics = [#tpu.dimension_semantics<parallel>], iteration_bounds = array<i64: 1>, scalar_prefetch = 0 : i64, scratch_operands = 0 : i64, tpu.core_type = #tpu.core_type<tc>, window_params = [{transform_indices = @transform_0, window_bounds = array<i64: 8, 128>}, {pipeline_mode = #tpu.pipeline_mode<synchronous>, transform_indices = @transform_1, window_bounds = array<i64: 128, 128>}, {pipeline_mode = #tpu.pipeline_mode<synchronous>, transform_indices = @transform_2, window_bounds = array<i64: 1, 128>}, {pipeline_mode = #tpu.pipeline_mode<synchronous>, transform_indices = @transform_3, window_bounds = array<i64: 128, 128>}, {pipeline_mode = #tpu.pipeline_mode<synchronous>, transform_indices = @transform_4, window_bounds = array<i64: 1, 128>}, {transform_indices = @transform_5, window_bounds = array<i64: 8, 128>}]} {
    %c0 = arith.constant 0 : index
    %c0_0 = arith.constant 0 : index
    %0 = vector.load %arg1[%c0, %c0_0] : memref<8x128xf32, #tpu.memory_space<vmem>>, vector<8x128xf32>
    %c0_1 = arith.constant 0 : index
    %c0_2 = arith.constant 0 : index
    %1 = vector.load %arg2[%c0_1, %c0_2] : memref<128x128xf32, #tpu.memory_space<vmem>>, vector<128x128xf32>
    %cst = arith.constant dense<0.000000e+00> : vector<8x128xf32>
    %2 = tpu.matmul %0, %1, %cst {dimension_numbers = #tpu.dot_dimension_numbers<[1], [0], [0], [1], [0, 0, 1, 1], [], []>} : vector<8x128xf32>, vector<128x128xf32>, vector<8x128xf32> -> vector<8x128xf32>
    %c0_3 = arith.constant 0 : index
    %c0_4 = arith.constant 0 : index
    %3 = vector.load %arg3[%c0_3, %c0_4] : memref<1x128xf32, #tpu.memory_space<vmem>>, vector<1x128xf32>
    %4 = vector.broadcast %3 : vector<1x128xf32> to vector<8x128xf32>
    %5 = arith.addf %2, %4 : vector<8x128xf32>
    %cst_5 = arith.constant 0.000000e+00 : f32
    %6 = vector.broadcast %cst_5 : f32 to vector<8x128xf32>
    %7 = arith.maximumf %5, %6 : vector<8x128xf32>
    %c0_6 = arith.constant 0 : index
    %c0_7 = arith.constant 0 : index
    %8 = vector.load %arg4[%c0_6, %c0_7] : memref<128x128xf32, #tpu.memory_space<vmem>>, vector<128x128xf32>
    %cst_8 = arith.constant dense<0.000000e+00> : vector<8x128xf32>
    %9 = tpu.matmul %7, %8, %cst_8 {dimension_numbers = #tpu.dot_dimension_numbers<[1], [0], [0], [1], [0, 0, 1, 1], [], []>} : vector<8x128xf32>, vector<128x128xf32>, vector<8x128xf32> -> vector<8x128xf32>
    %c0_9 = arith.constant 0 : index
    %c0_10 = arith.constant 0 : index
    %10 = vector.load %arg5[%c0_9, %c0_10] : memref<1x128xf32, #tpu.memory_space<vmem>>, vector<1x128xf32>
    %11 = vector.broadcast %10 : vector<1x128xf32> to vector<8x128xf32>
    %12 = arith.addf %9, %11 : vector<8x128xf32>
    %13 = arith.negf %12 : vector<8x128xf32>
    %14 = math.exp %13 : vector<8x128xf32>
    %cst_11 = arith.constant 1.000000e+00 : f32
    %15 = vector.broadcast %cst_11 : f32 to vector<8x128xf32>
    %16 = arith.addf %15, %14 : vector<8x128xf32>
    %17 = arith.divf %15, %16 : vector<8x128xf32>
    %c0_12 = arith.constant 0 : index
    %c0_13 = arith.constant 0 : index
    %18 = vector.load %arg6[%c0_12, %c0_13] : memref<8x128xf32, #tpu.memory_space<vmem>>, vector<8x128xf32>
    tpu.vector_store %arg6[%c0_12, %c0_13], %17 {strides = array<i32>} : memref<8x128xf32, #tpu.memory_space<vmem>>, vector<8x128xf32>,
    return
  }
  func.func @transform_0(%arg0: i32) -> (i32, i32) {
    %c0_i32 = arith.constant 0 : i32
    %c0_i32_0 = arith.constant 0 : i32
    return %arg0, %c0_i32 : i32, i32
  }
  func.func @transform_1(%arg0: i32) -> (i32, i32) {
    %c0_i32 = arith.constant 0 : i32
    %c0_i32_0 = arith.constant 0 : i32
    %c0_i32_1 = arith.constant 0 : i32
    return %c0_i32, %c0_i32_0 : i32, i32
  }
  func.func @transform_2(%arg0: i32) -> (i32, i32) {
    %c0_i32 = arith.constant 0 : i32
    %c0_i32_0 = arith.constant 0 : i32
    %c0_i32_1 = arith.constant 0 : i32
    return %c0_i32, %c0_i32_0 : i32, i32
  }
  func.func @transform_3(%arg0: i32) -> (i32, i32) {
    %c0_i32 = arith.constant 0 : i32
    %c0_i32_0 = arith.constant 0 : i32
    %c0_i32_1 = arith.constant 0 : i32
    return %c0_i32, %c0_i32_0 : i32, i32
  }
  func.func @transform_4(%arg0: i32) -> (i32, i32) {
    %c0_i32 = arith.constant 0 : i32
    %c0_i32_0 = arith.constant 0 : i32
    %c0_i32_1 = arith.constant 0 : i32
    return %c0_i32, %c0_i32_0 : i32, i32
  }
  func.func @transform_5(%arg0: i32) -> (i32, i32) {
    %c0_i32 = arith.constant 0 : i32
    %c0_i32_0 = arith.constant 0 : i32
    return %arg0, %c0_i32 : i32, i32
  }
}

</mosaic_0001>

<bundles_post_ra>
// kernel: dimension_transform_block.1
= control target key start
LH: loop header
LB: loop body
LE: loop exit
PB: predicated region body
PF: predicated region fallthrough
CT: control target
= control target key end

     0   :  { %10 = vsyncpa [#allocation3], 0  ;;  %s423_s18 = smov [#allocation2]   ;;  %s547_s0 = inlined_call_operand.vmem [shape: f32[8,128], index: 0, kind: input, shape index: {}]   ;;  %s548_s1 = inlined_call_operand.vmem [shape: f32[128,128], index: 1, kind: input, shape index: {}]   ;;  %s549_s2 = inlined_call_operand.vmem [shape: f32[1,128], index: 2, kind: input, shape index: {}]   ;;  %s550_s3 = inlined_call_operand.hbm [shape: f32[128,128], index: 3, kind: input, shape index: {}]   ;;  %s551_s4 = inlined_call_operand.vmem [shape: f32[1,128], index: 4, kind: input, shape index: {}]   ;;  %s552_s5 = inlined_call_operand.vmem [shape: f32[8,128], index: 5, kind: output, shape index: {}]  }
   0x1   :  { %s22_s19 = sshll.u32 %s423_s18, 4  ;;  %s399_s22 = scalar_lea.hbm %s550_s3, 2048  ;;  %s23_s19 = int_to_ptr.vmem [resolvable:$true] %s22_s19 }
   0x2   :  { %p400_p0 = scmp.ne.s32.totalorder %s550_s3, %s399_s22  ;;  %p403_p1 = scmp.lt.u32.totalorder %s399_s22, %s550_s3 }
   0x4   :  { %p405_p2 = pnand %p403_p1, %p400_p0 }
   0x6   :  { %408 = shalt.err (!%p405_p2)
}
   0x7   :  { %s409_s27 = scalar_lea.vmem %s23_s19, 2048  ;;  %p414_p4 = scmp.lt.s32.totalorder %s23_s19, %s23_s19 }
   0x8   :  { %p410_p3 = scmp.ne.s32.totalorder %s23_s19, %s409_s27  ;;  %p415_p5 = scmp.lt.s32.totalorder %s409_s27, %s409_s27 }
   0xa   :  { %p416_p6 = por %p415_p5, %p414_p4 }
   0xc   :  { %p417_p7 = pnand %p416_p6, %p410_p3 }
   0xe   :  { %420 = shalt.err (!%p417_p7)
}
   0xf   :  { %s424_s28 = smov 128   ;;  %s425_s29 = smov 8  }
  0x10   :  { %28 = dma.hbm_to_vmem [thread:$0]  %s550_s3, 2048, %s23_s19, [#allocation3], %s424_s28, %s424_s28, %s425_s29  }
  0x11   :  { %421 = dma.done.wait [#allocation3], 2048  }
  0x12   :  { %422 = vsyncadd [#allocation3], 4294965248  ;;  %v426_v0 = vmov 0.0|0.0   ;;  %vm427_vm0 = vmmov 0   ;;  %v428_v1 = vmov 0.0   ;;  %v35_v2 = vld [vmem:[%s548_s1] sm:$0xff] }
  0x13   :  { %341 = vmatprep.subr.bf16.mxu0 %v426_v0  ;;  %303 = vmatprep.mubr.msk.f32.mxu0 %vm427_vm0, %v428_v1  ;;  %v36_v3 = vld [vmem:[%s548_s1 + $0x8] sm:$0xff]  ;;  %v37_v4 = vld [vmem:[%s548_s1 + $0x10] sm:$0xff]  ;;  %v38_v6 = vld [vmem:[%s548_s1 + $0x18] sm:$0xff] }
  0x14   :  { %365 = vmatprep.subr.bf16.mxu1 %v426_v0  ;;  %338 = vmatprep.mubr.msk.f32.mxu1 %vm427_vm0, %v428_v1  ;;  %v342_v5 = vpack.c.bf16 %v36_v3, %v35_v2  ;;  %v345_v7 = vpack.c.bf16 %v38_v6, %v37_v4  ;;  %v39_v8 = vld [vmem:[%s548_s1 + $0x20] sm:$0xff]  ;;  %v40_v9 = vld [vmem:[%s548_s1 + $0x28] sm:$0xff]  ;;  %v131_v12 = vld [vmem:[#allocation2 + $0x10] sm:$0xff] }
  0x15   :  { %v129_v10 = vld [vmem:[#allocation2] sm:$0xff]  ;;  %v130_v11 = vld [vmem:[#allocation2 + $0x8] sm:$0xff]  ;;  %v132_v13 = vld [vmem:[#allocation2 + $0x18] sm:$0xff]  ;;  %v348_v14 = vpack.c.bf16 %v40_v9, %v39_v8 }
  0x16   :  { %343 = vmatpush3.bf16.msra.mxu0 %v342_v5  ;;  %v366_v15 = vpack.c.bf16 %v130_v11, %v129_v10  ;;  %v41_v16 = vld [vmem:[%s548_s1 + $0x30] sm:$0xff]  ;;  %v42_v17 = vld [vmem:[%s548_s1 + $0x38] sm:$0xff]  ;;  %v369_v18 = vpack.c.bf16 %v132_v13, %v131_v12  ;;  %v133_v19 = vld [vmem:[#allocation2 + $0x20] sm:$0xff] }
  0x17   :  { %344 = vmatprep.subr.bf16.mxu0 %v426_v0  ;;  %v134_v20 = vld [vmem:[#allocation2 + $0x28] sm:$0xff]  ;;  %v351_v21 = vpack.c.bf16 %v42_v17, %v41_v16  ;;  %v43_v22 = vld [vmem:[%s548_s1 + $0x40] sm:$0xff]  ;;  %v135_v25 = vld [vmem:[#allocation2 + $0x30] sm:$0xff] }
  0x18   :  { %367 = vmatpush3.bf16.msra.mxu1 %v366_v15  ;;  %v44_v23 = vld [vmem:[%s548_s1 + $0x48] sm:$0xff]  ;;  %v372_v24 = vpack.c.bf16 %v134_v20, %v133_v19  ;;  %v136_v26 = vld [vmem:[#allocation2 + $0x38] sm:$0xff]  ;;  %v45_v28 = vld [vmem:[%s548_s1 + $0x50] sm:$0xff] }
  0x19   :  { %368 = vmatprep.subr.bf16.mxu1 %v426_v0  ;;  %v354_v27 = vpack.c.bf16 %v44_v23, %v43_v22  ;;  %v46_v29 = vld [vmem:[%s548_s1 + $0x58] sm:$0xff]  ;;  %v375_v30 = vpack.c.bf16 %v136_v26, %v135_v25  ;;  %v137_v31 = vld [vmem:[#allocation2 + $0x40] sm:$0xff]  ;;  %v138_v32 = vld [vmem:[#allocation2 + $0x48] sm:$0xff] }
  0x1a   :  { %346 = vmatpush3.bf16.msra.mxu0 %v345_v7  ;;  %v357_v33 = vpack.c.bf16 %v46_v29, %v45_v28  ;;  %v47_v34 = vld [vmem:[%s548_s1 + $0x60] sm:$0xff]  ;;  %v48_v35 = vld [vmem:[%s548_s1 + $0x68] sm:$0xff]  ;;  %v378_v36 = vpack.c.bf16 %v138_v32, %v137_v31  ;;  %v139_v37 = vld [vmem:[#allocation2 + $0x50] sm:$0xff] }
  0x1b   :  { %347 = vmatprep.subr.bf16.mxu0 %v426_v0  ;;  %v140_v38 = vld [vmem:[#allocation2 + $0x58] sm:$0xff]  ;;  %v360_v39 = vpack.c.bf16 %v48_v35, %v47_v34  ;;  %v49_v40 = vld [vmem:[%s548_s1 + $0x70] sm:$0xff]  ;;  %v141_v43 = vld [vmem:[#allocation2 + $0x60] sm:$0xff] }
  0x1c   :  { %370 = vmatpush3.bf16.msra.mxu1 %v369_v18  ;;  %v50_v41 = vld [vmem:[%s548_s1 + $0x78] sm:$0xff]  ;;  %v381_v42 = vpack.c.bf16 %v140_v38, %v139_v37  ;;  %v142_v44 = vld [vmem:[#allocation2 + $0x68] sm:$0xff]  ;;  %v34_v47 = vld [vmem:[%s547_s0] sm:$0xff] }
  0x1d   :  { %371 = vmatprep.subr.bf16.mxu1 %v426_v0  ;;  %v363_v45 = vpack.c.bf16 %v50_v41, %v49_v40  ;;  %v384_v46 = vpack.c.bf16 %v142_v44, %v141_v43  ;;  %v143_v48 = vld [vmem:[#allocation2 + $0x70] sm:$0xff]  ;;  %v144_v49 = vld [vmem:[#allocation2 + $0x78] sm:$0xff]  ;;  %v234_v51 = vld [vmem:[%s549_s2] ss:$0 sm:$0xff] }
  0x1e   :  { %349 = vmatpush3.bf16.msra.mxu0 %v348_v14  ;;  %v387_v50 = vpack.c.bf16 %v144_v49, %v143_v48  ;;  %v235_v56 = vld [vmem:[%s551_s4] ss:$0 sm:$0xff] }
  0x1f   :  { %350 = vmatprep.subr.bf16.mxu0 %v426_v0 }
  0x20   :  { %373 = vmatpush3.bf16.msra.mxu1 %v372_v24 }
  0x21   :  { %374 = vmatprep.subr.bf16.mxu1 %v426_v0 }
  0x22   :  { %352 = vmatpush3.bf16.msra.mxu0 %v351_v21 }
  0x23   :  { %353 = vmatprep.subr.bf16.mxu0 %v426_v0 }
  0x24   :  { %376 = vmatpush3.bf16.msra.mxu1 %v375_v30 }
  0x25   :  { %377 = vmatprep.subr.bf16.mxu1 %v426_v0 }
  0x26   :  { %355 = vmatpush3.bf16.msra.mxu0 %v354_v27 }
  0x27   :  { %356 = vmatprep.subr.bf16.mxu0 %v426_v0 }
  0x28   :  { %379 = vmatpush3.bf16.msra.mxu1 %v378_v36 }
  0x29   :  { %380 = vmatprep.subr.bf16.mxu1 %v426_v0 }
  0x2a   :  { %358 = vmatpush3.bf16.msra.mxu0 %v357_v33 }
  0x2b   :  { %359 = vmatprep.subr.bf16.mxu0 %v426_v0 }
  0x2c   :  { %382 = vmatpush3.bf16.msra.mxu1 %v381_v42 }
  0x2d   :  { %383 = vmatprep.subr.bf16.mxu1 %v426_v0 }
  0x2e   :  { %361 = vmatpush3.bf16.msra.mxu0 %v360_v39 }
  0x2f   :  { %362 = vmatprep.subr.bf16.mxu0 %v426_v0 }
  0x30   :  { %385 = vmatpush3.bf16.msra.mxu1 %v384_v46 }
  0x31   :  { %386 = vmatprep.subr.bf16.mxu1 %v426_v0 }
  0x32   :  { %364 = vmatpush3.bf16.msra.mxu0 %v363_v45 }
  0x34   :  { %388 = vmatpush3.bf16.msra.mxu1 %v387_v50 }
  0x35   :  { %304 = vmatmul.mubr.f32.vlgmr.msra.gmra.mrb[0].mxu0 %v34_v47 }
 0x108   :  { %v124_v52 = vpop.f32.mrb[0].mxu0 }
 0x109   :  { %v125_v53 = vadd.f32 %v234_v51, %v124_v52  ;;  %v305_v54 = vpop.f32.mrb[1].mxu0 }
 0x10b   :  { %v128_v55 = vmax.f32 %v125_v53, 0.0 }
 0x10d   :  { %339 = vmatmul.mubr.f32.vlgmr.msra.gmra.mrb[0].mxu1 %v128_v55 }
 0x1e0   :  { %v218_v57 = vpop.f32.mrb[0].mxu1 }
 0x1e1   :  { %v219_v58 = vadd.f32 %v235_v56, %v218_v57  ;;  %v340_v59 = vpop.f32.mrb[1].mxu1 }
 0x1e3   :  { %v236_v60 = vmul.f32 -1.442695, %v219_v58 }
 0x1e5   :  { %395 = vpow2.f32 %v236_v60 }
 0x1ef   :  { %v396_v61 = vpop.eup %395 }
 0x1f0   :  { %v225_v62 = vadd.f32 1.0, %v396_v61 }
 0x1f2   :  { %397 = vrcp.f32 %v225_v62 }
 0x1fc   :  { %v398_v63 = vpop.eup %397 }
 0x1fd   :  { %228 = vst [vmem:[%s552_s5] sm:$0xff] %v398_v63 }
 0x1fe   :  { %233 = vsyncpa [#allocation3], 1 }

// kernel: dimension_transform_block.1
= control target key start
LH: loop header
LB: loop body
LE: loop exit
PB: predicated region body
PF: predicated region fallthrough
CT: control target
= control target key end

     0   :  { %10 = vsyncpa [#allocation3], 0  ;;  %s423_s18 = smov [#allocation2]   ;;  %s547_s0 = inlined_call_operand.vmem [shape: f32[8,128], index: 0, kind: input, shape index: {}]   ;;  %s548_s1 = inlined_call_operand.vmem [shape: f32[128,128], index: 1, kind: input, shape index: {}]   ;;  %s549_s2 = inlined_call_operand.vmem [shape: f32[1,128], index: 2, kind: input, shape index: {}]   ;;  %s550_s3 = inlined_call_operand.hbm [shape: f32[128,128], index: 3, kind: input, shape index: {}]   ;;  %s551_s4 = inlined_call_operand.vmem [shape: f32[1,128], index: 4, kind: input, shape index: {}]   ;;  %s552_s5 = inlined_call_operand.vmem [shape: f32[8,128], index: 5, kind: output, shape index: {}]  }
   0x1   :  { %s22_s19 = sshll.u32 %s423_s18, 4  ;;  %s399_s22 = scalar_lea.hbm %s550_s3, 2048  ;;  %s23_s19 = int_to_ptr.vmem [resolvable:$true] %s22_s19 }
   0x2   :  { %p400_p0 = scmp.ne.s32.totalorder %s550_s3, %s399_s22  ;;  %p403_p1 = scmp.lt.u32.totalorder %s399_s22, %s550_s3 }
   0x4   :  { %p405_p2 = pnand %p403_p1, %p400_p0 }
   0x6   :  { %408 = shalt.err (!%p405_p2)
}
   0x7   :  { %s409_s27 = scalar_lea.vmem %s23_s19, 2048  ;;  %p414_p4 = scmp.lt.s32.totalorder %s23_s19, %s23_s19 }
   0x8   :  { %p410_p3 = scmp.ne.s32.totalorder %s23_s19, %s409_s27  ;;  %p415_p5 = scmp.lt.s32.totalorder %s409_s27, %s409_s27 }
   0xa   :  { %p416_p6 = por %p415_p5, %p414_p4 }
   0xc   :  { %p417_p7 = pnand %p416_p6, %p410_p3 }
   0xe   :  { %420 = shalt.err (!%p417_p7)
}
   0xf   :  { %s424_s28 = smov 128   ;;  %s425_s29 = smov 8  }
  0x10   :  { %28 = dma.hbm_to_vmem [thread:$0]  %s550_s3, 2048, %s23_s19, [#allocation3], %s424_s28, %s424_s28, %s425_s29  }
  0x11   :  { %421 = dma.done.wait [#allocation3], 2048  }
  0x12   :  { %422 = vsyncadd [#allocation3], 4294965248  ;;  %v426_v0 = vmov 0.0|0.0   ;;  %vm427_vm0 = vmmov 0   ;;  %v428_v1 = vmov 0.0   ;;  %v35_v2 = vld [vmem:[%s548_s1] sm:$0xff] }
  0x13   :  { %341 = vmatprep.subr.bf16.mxu0 %v426_v0  ;;  %303 = vmatprep.mubr.msk.f32.mxu0 %vm427_vm0, %v428_v1  ;;  %v36_v3 = vld [vmem:[%s548_s1 + $0x8] sm:$0xff]  ;;  %v37_v4 = vld [vmem:[%s548_s1 + $0x10] sm:$0xff]  ;;  %v38_v6 = vld [vmem:[%s548_s1 + $0x18] sm:$0xff] }
  0x14   :  { %365 = vmatprep.subr.bf16.mxu1 %v426_v0  ;;  %338 = vmatprep.mubr.msk.f32.mxu1 %vm427_vm0, %v428_v1  ;;  %v342_v5 = vpack.c.bf16 %v36_v3, %v35_v2  ;;  %v345_v7 = vpack.c.bf16 %v38_v6, %v37_v4  ;;  %v39_v8 = vld [vmem:[%s548_s1 + $0x20] sm:$0xff]  ;;  %v40_v9 = vld [vmem:[%s548_s1 + $0x28] sm:$0xff]  ;;  %v131_v12 = vld [vmem:[#allocation2 + $0x10] sm:$0xff] }
  0x15   :  { %v129_v10 = vld [vmem:[#allocation2] sm:$0xff]  ;;  %v130_v11 = vld [vmem:[#allocation2 + $0x8] sm:$0xff]  ;;  %v132_v13 = vld [vmem:[#allocation2 + $0x18] sm:$0xff]  ;;  %v348_v14 = vpack.c.bf16 %v40_v9, %v39_v8 }
  0x16   :  { %343 = vmatpush3.bf16.msra.mxu0 %v342_v5  ;;  %v366_v15 = vpack.c.bf16 %v130_v11, %v129_v10  ;;  %v41_v16 = vld [vmem:[%s548_s1 + $0x30] sm:$0xff]  ;;  %v42_v17 = vld [vmem:[%s548_s1 + $0x38] sm:$0xff]  ;;  %v369_v18 = vpack.c.bf16 %v132_v13, %v131_v12  ;;  %v133_v19 = vld [vmem:[#allocation2 + $0x20] sm:$0xff] }
  0x17   :  { %344 = vmatprep.subr.bf16.mxu0 %v426_v0  ;;  %v134_v20 = vld [vmem:[#allocation2 + $0x28] sm:$0xff]  ;;  %v351_v21 = vpack.c.bf16 %v42_v17, %v41_v16  ;;  %v43_v22 = vld [vmem:[%s548_s1 + $0x40] sm:$0xff]  ;;  %v135_v25 = vld [vmem:[#allocation2 + $0x30] sm:$0xff] }
  0x18   :  { %367 = vmatpush3.bf16.msra.mxu1 %v366_v15  ;;  %v44_v23 = vld [vmem:[%s548_s1 + $0x48] sm:$0xff]  ;;  %v372_v24 = vpack.c.bf16 %v134_v20, %v133_v19  ;;  %v136_v26 = vld [vmem:[#allocation2 + $0x38] sm:$0xff]  ;;  %v45_v28 = vld [vmem:[%s548_s1 + $0x50] sm:$0xff] }
  0x19   :  { %368 = vmatprep.subr.bf16.mxu1 %v426_v0  ;;  %v354_v27 = vpack.c.bf16 %v44_v23, %v43_v22  ;;  %v46_v29 = vld [vmem:[%s548_s1 + $0x58] sm:$0xff]  ;;  %v375_v30 = vpack.c.bf16 %v136_v26, %v135_v25  ;;  %v137_v31 = vld [vmem:[#allocation2 + $0x40] sm:$0xff]  ;;  %v138_v32 = vld [vmem:[#allocation2 + $0x48] sm:$0xff] }
  0x1a   :  { %346 = vmatpush3.bf16.msra.mxu0 %v345_v7  ;;  %v357_v33 = vpack.c.bf16 %v46_v29, %v45_v28  ;;  %v47_v34 = vld [vmem:[%s548_s1 + $0x60] sm:$0xff]  ;;  %v48_v35 = vld [vmem:[%s548_s1 + $0x68] sm:$0xff]  ;;  %v378_v36 = vpack.c.bf16 %v138_v32, %v137_v31  ;;  %v139_v37 = vld [vmem:[#allocation2 + $0x50] sm:$0xff] }
  0x1b   :  { %347 = vmatprep.subr.bf16.mxu0 %v426_v0  ;;  %v140_v38 = vld [vmem:[#allocation2 + $0x58] sm:$0xff]  ;;  %v360_v39 = vpack.c.bf16 %v48_v35, %v47_v34  ;;  %v49_v40 = vld [vmem:[%s548_s1 + $0x70] sm:$0xff]  ;;  %v141_v43 = vld [vmem:[#allocation2 + $0x60] sm:$0xff] }
  0x1c   :  { %370 = vmatpush3.bf16.msra.mxu1 %v369_v18  ;;  %v50_v41 = vld [vmem:[%s548_s1 + $0x78] sm:$0xff]  ;;  %v381_v42 = vpack.c.bf16 %v140_v38, %v139_v37  ;;  %v142_v44 = vld [vmem:[#allocation2 + $0x68] sm:$0xff]  ;;  %v34_v47 = vld [vmem:[%s547_s0] sm:$0xff] }
  0x1d   :  { %371 = vmatprep.subr.bf16.mxu1 %v426_v0  ;;  %v363_v45 = vpack.c.bf16 %v50_v41, %v49_v40  ;;  %v384_v46 = vpack.c.bf16 %v142_v44, %v141_v43  ;;  %v143_v48 = vld [vmem:[#allocation2 + $0x70] sm:$0xff]  ;;  %v144_v49 = vld [vmem:[#allocation2 + $0x78] sm:$0xff]  ;;  %v234_v51 = vld [vmem:[%s549_s2] ss:$0 sm:$0xff] }
  0x1e   :  { %349 = vmatpush3.bf16.msra.mxu0 %v348_v14  ;;  %v387_v50 = vpack.c.bf16 %v144_v49, %v143_v48  ;;  %v235_v56 = vld [vmem:[%s551_s4] ss:$0 sm:$0xff] }
  0x1f   :  { %350 = vmatprep.subr.bf16.mxu0 %v426_v0 }
  0x20   :  { %373 = vmatpush3.bf16.msra.mxu1 %v372_v24 }
  0x21   :  { %374 = vmatprep.subr.bf16.mxu1 %v426_v0 }
  0x22   :  { %352 = vmatpush3.bf16.msra.mxu0 %v351_v21 }
  0x23   :  { %353 = vmatprep.subr.bf16.mxu0 %v426_v0 }
  0x24   :  { %376 = vmatpush3.bf16.msra.mxu1 %v375_v30 }
  0x25   :  { %377 = vmatprep.subr.bf16.mxu1 %v426_v0 }
  0x26   :  { %355 = vmatpush3.bf16.msra.mxu0 %v354_v27 }
  0x27   :  { %356 = vmatprep.subr.bf16.mxu0 %v426_v0 }
  0x28   :  { %379 = vmatpush3.bf16.msra.mxu1 %v378_v36 }
  0x29   :  { %380 = vmatprep.subr.bf16.mxu1 %v426_v0 }
  0x2a   :  { %358 = vmatpush3.bf16.msra.mxu0 %v357_v33 }
  0x2b   :  { %359 = vmatprep.subr.bf16.mxu0 %v426_v0 }
  0x2c   :  { %382 = vmatpush3.bf16.msra.mxu1 %v381_v42 }
  0x2d   :  { %383 = vmatprep.subr.bf16.mxu1 %v426_v0 }
  0x2e   :  { %361 = vmatpush3.bf16.msra.mxu0 %v360_v39 }
  0x2f   :  { %362 = vmatprep.subr.bf16.mxu0 %v426_v0 }
  0x30   :  { %385 = vmatpush3.bf16.msra.mxu1 %v384_v46 }
  0x31   :  { %386 = vmatprep.subr.bf16.mxu1 %v426_v0 }
  0x32   :  { %364 = vmatpush3.bf16.msra.mxu0 %v363_v45 }
  0x34   :  { %388 = vmatpush3.bf16.msra.mxu1 %v387_v50 }
  0x35   :  { %304 = vmatmul.mubr.f32.vlgmr.msra.gmra.mrb[0].mxu0 %v34_v47 }
 0x108   :  { %v124_v52 = vpop.f32.mrb[0].mxu0 }
 0x109   :  { %v125_v53 = vadd.f32 %v234_v51, %v124_v52  ;;  %v305_v54 = vpop.f32.mrb[1].mxu0 }
 0x10b   :  { %v128_v55 = vmax.f32 %v125_v53, 0.0 }
 0x10d   :  { %339 = vmatmul.mubr.f32.vlgmr.msra.gmra.mrb[0].mxu1 %v128_v55 }
 0x1e0   :  { %v218_v57 = vpop.f32.mrb[0].mxu1 }
 0x1e1   :  { %v219_v58 = vadd.f32 %v235_v56, %v218_v57  ;;  %v340_v59 = vpop.f32.mrb[1].mxu1 }
 0x1e3   :  { %v236_v60 = vmul.f32 -1.442695, %v219_v58 }
 0x1e5   :  { %395 = vpow2.f32 %v236_v60 }
 0x1ef   :  { %v396_v61 = vpop.eup %395 }
 0x1f0   :  { %v225_v62 = vadd.f32 1.0, %v396_v61 }
 0x1f2   :  { %397 = vrcp.f32 %v225_v62 }
 0x1fc   :  { %v398_v63 = vpop.eup %397 }
 0x1fd   :  { %228 = vst [vmem:[%s552_s5] sm:$0xff] %v398_v63 }
 0x1fe   :  { %233 = vsyncpa [#allocation3], 1 }

</bundles_post_ra>
